<compile_context>
chip_gen: v7x
topology: tpu7x:2x2x1
jax: 0.10.0
libtpu: 0.0.40
codegen_flags: <defaults>
</compile_context>

<pallas_src>
import functools
import itertools

import jax
import jax.numpy as jnp
from jax import lax
from jax.experimental import pallas as pl
from jax.experimental.pallas import tpu as pltpu


# ----------------------------- Pallas kernel -------------------------------

def bca_kernel(xq_ref, fxq_ref, fy_ref, fva_ref, b_up_ref, o_ref, *,
               cx, bf16_probs):
    """One (batch, q-tile) grid step; all N keys resident.

    Shapes (per step):
      xq_ref  : (1, Cx, TQ)   bf16  residual x tile
      fxq_ref : (1, mid, TQ)  bf16  precomputed f_x(x) query tile
      fy_ref  : (1, mid, N)   bf16  precomputed f_y(y), all keys
      fva_ref : (1, Cx+1, N)  bf16  precomputed f_up∘f_self(x) values + ones row
      b_up_ref: (Cx, 1)       f32   folded f_up bias
      o_ref   : (1, Cx, TQ)   out dtype
    """
    # similarity: s[k, q] = sum_m fy[m, k] * fxq[m, q]      -> (N, TQ) f32
    s = lax.dot_general(fy_ref[0], fxq_ref[0],
                        dimension_numbers=(((0,), (0,)), ((), ())),
                        preferred_element_type=jnp.float32)

    # single-pass softmax over the key (sublane) axis
    m = jnp.max(s, axis=0, keepdims=True)                    # (1, TQ) f32
    if bf16_probs:
        # v6e/v7x: halve EUP work and vreg pressure for the prob tile.
        p = jnp.exp((s - m).astype(jnp.bfloat16))             # (N, TQ) bf16
    else:
        p = jnp.exp(s - m).astype(jnp.bfloat16)               # (N, TQ) bf16

    # One MXU matmul: rows 0..Cx-1 = numerator, row Cx (ones row) = sum_k p.
    acc = jnp.dot(fva_ref[0], p,
                  preferred_element_type=jnp.float32)          # (Cx+1, TQ) f32

    inv_l = pl.reciprocal(acc[cx:cx + 1, :], approx=True)      # (1, TQ)
    attn = acc[:cx, :] * inv_l + b_up_ref[...]                 # (Cx, TQ)
    o_ref[0] = (xq_ref[0].astype(jnp.float32) + attn).astype(o_ref.dtype)


# ------------------------------- wrapper ------------------------------------

def _pick_tile(n, target):
    """Largest multiple of 128 <= target that divides n (or n itself)."""
    if n % 128 != 0:
        return n                      # full extent (always a legal block dim)
    t = max(128, (min(target, n) // 128) * 128)
    while n % t != 0:
        t -= 128
    return t


def bca_forward(x, y, params, *, tq=512, bf16_probs=False):
    """x: (B, Cx, H, W), y: (B, Cy, H, W) in NCHW.  Returns NCHW in x.dtype."""
    B, Cx, H, W = x.shape
    Cy = y.shape[1]
    N = H * W
    mid = params["w_x"].shape[0]
    tq = _pick_tile(N, tq)

    # NCHW-native: just flatten spatial dims onto the lane axis (no transpose).
    x_cn = x.reshape(B, Cx, N).astype(jnp.bfloat16)
    y_cn = y.reshape(B, Cy, N).astype(jnp.bfloat16)

    w_x = params["w_x"].astype(jnp.bfloat16)
    w_y = params["w_y"].astype(jnp.bfloat16)
    w_su = params["w_su"].astype(jnp.bfloat16)
    b_up = params["b_up"].astype(jnp.float32)                 # (Cx, 1)

    # Per-batch projections (mid*C*N flops) done once in XLA, not per q tile.
    fxq = (jnp.einsum("mc,bcn->bmn", w_x, x_cn,
                      preferred_element_type=jnp.float32)
           + params["b_x"][None]).astype(jnp.bfloat16)         # (B, mid, N)
    fy = (jnp.einsum("mc,bcn->bmn", w_y, y_cn,
                     preferred_element_type=jnp.float32)
          + params["b_y"][None]).astype(jnp.bfloat16)          # (B, mid, N)
    fv = (jnp.einsum("cd,bdn->bcn", w_su, x_cn,
                     preferred_element_type=jnp.float32)
          + params["b_su"][None]).astype(jnp.bfloat16)         # (B, Cx, N)
    # Ones row fuses the softmax denominator into the PV matmul.
    fva = jnp.concatenate(
        [fv, jnp.ones((B, 1, N), jnp.bfloat16)], axis=1)       # (B, Cx+1, N)

    grid = (B, N // tq)
    out_dtype = x.dtype

    flops = 2 * B * N * N * (mid + Cx + 1)
    transcendentals = B * N * N
    bytes_accessed = (2 * B * mid * N * 2 + B * (Cx + 1) * N * 2
                      + B * Cx * N * 2
                      + B * Cx * N * jnp.dtype(out_dtype).itemsize)

    # (N, TQ) f32 score + prob temporaries; raise the scoped VMEM limit only
    # when they would not fit under the ~32 MiB default (very large H*W).
    # For N large enough that this exceeds physical VMEM, fall back to a
    # flash-style k-tiled variant instead of growing the limit further.
    score_bytes = 2 * N * tq * 4
    compiler_kwargs = dict(dimension_semantics=("parallel", "parallel"))
    if score_bytes > (24 << 20):
        compiler_kwargs["vmem_limit_bytes"] = min(score_bytes + (8 << 20),
                                                  100 << 20)

    out = pl.pallas_call(
        functools.partial(bca_kernel, cx=Cx, bf16_probs=bf16_probs),
        out_shape=jax.ShapeDtypeStruct((B, Cx, N), out_dtype),
        grid_spec=pltpu.PrefetchScalarGridSpec(
            num_scalar_prefetch=0,
            grid=grid,
            in_specs=[
                pl.BlockSpec((1, Cx, tq), lambda b, j: (b, 0, j)),      # x residual
                pl.BlockSpec((1, mid, tq), lambda b, j: (b, 0, j)),     # f_x(x) q tile
                pl.BlockSpec((1, mid, N), lambda b, j: (b, 0, 0)),      # f_y(y), all keys
                pl.BlockSpec((1, Cx + 1, N), lambda b, j: (b, 0, 0)),   # values + ones row
                pl.BlockSpec((Cx, 1), lambda b, j: (0, 0)),             # b_up
            ],
            out_specs=pl.BlockSpec((1, Cx, tq), lambda b, j: (b, 0, j)),
        ),
        compiler_params=pltpu.CompilerParams(**compiler_kwargs),
        cost_estimate=pl.CostEstimate(flops=flops,
                                      transcendentals=transcendentals,
                                      bytes_accessed=bytes_accessed),
    )(x_cn, fxq, fy, fva, b_up)

    return out.reshape(B, Cx, H, W)


# ----------------------- deterministic parameter setup ----------------------

def _fold_conv_bn(w, gamma, beta, mean, var, eps=1e-5):
    """Fold 1x1 conv weight (out, in) + inference-mode BN into affine (W, b)."""
    s = gamma / jnp.sqrt(var + eps)
    return w * s[:, None], beta - mean * s


def _compose_affine(w1, b1, w2, b2):
    """x -> w2 @ (w1 @ x + b1) + b2."""
    return w2 @ w1, w2 @ b1 + b2


def make_params(key, xin, yin, mid, *, scale=False):
    """Folded weights for f_self / f_x / f_y / f_up (channels-first layout).

    BN is folded in inference mode.  NOTE: the PyTorch __init__ zero-inits the
    f_up BatchNorm (gamma = beta = 0), which makes out == x at init; nonzero
    deterministic values are used here so the full attention path is exercised.
    """
    counter = itertools.count(1)

    def nkey():
        return jax.random.fold_in(key, next(counter))

    def conv_bn(cin, cout):
        w = jax.random.normal(nkey(), (cout, cin), jnp.float32) * 0.2
        gamma = 1.0 + 0.1 * jax.random.normal(nkey(), (cout,), jnp.float32)
        beta = 0.1 * jax.random.normal(nkey(), (cout,), jnp.float32)
        mean = 0.05 * jax.random.normal(nkey(), (cout,), jnp.float32)
        var = jnp.ones((cout,), jnp.float32)
        return _fold_conv_bn(w, gamma, beta, mean, var)

    def two_layer(cin, cout):
        w1, b1 = conv_bn(cin, cout)
        w2, b2 = conv_bn(cout, cout)
        return _compose_affine(w1, b1, w2, b2)

    w_self, b_self = two_layer(xin, mid)     # (mid, xin), (mid,)
    w_x, b_x = two_layer(xin, mid)           # (mid, xin), (mid,)
    w_y, b_y = two_layer(yin, mid)           # (mid, yin), (mid,)
    w_up, b_up = conv_bn(mid, xin)           # (xin, mid), (xin,)

    if scale:                                # fold mid**-0.5 into f_x
        inv = mid ** -0.5
        w_x = w_x * inv
        b_x = b_x * inv

    # Fold f_up into f_self (exact since softmax weights sum to 1):
    #   out_q = sum_k P[q,k] (W_up @ f_self(x_k)) + b_up
    w_su = w_up @ w_self                     # (xin, xin)
    b_su = w_up @ b_self                     # (xin,)

    return {
        "w_x": w_x, "b_x": b_x[:, None],
        "w_y": w_y, "b_y": b_y[:, None],
        "w_su": w_su, "b_su": b_su[:, None],
        "b_up": b_up[:, None],
    }


# --------------------------- pure-JAX reference ------------------------------

def bca_reference(x, y, params):
    """Reference with the same bf16-operand / f32-accumulation casting."""
    B, Cx, H, W = x.shape
    Cy = y.shape[1]
    N = H * W
    xb = x.reshape(B, Cx, N).astype(jnp.bfloat16)
    yb = y.reshape(B, Cy, N).astype(jnp.bfloat16)
    wx = params["w_x"].astype(jnp.bfloat16)
    wy = params["w_y"].astype(jnp.bfloat16)
    wsu = params["w_su"].astype(jnp.bfloat16)

    fx = (jnp.einsum("mc,bcn->bmn", wx, xb, preferred_element_type=jnp.float32)
          + params["b_x"][None]).astype(jnp.bfloat16)                    # (B, mid, N)
    fy = (jnp.einsum("mc,bcn->bmn", wy, yb, preferred_element_type=jnp.float32)
          + params["b_y"][None]).astype(jnp.bfloat16)                    # (B, mid, N)
    fv = (jnp.einsum("cd,bdn->bcn", wsu, xb, preferred_element_type=jnp.float32)
          + params["b_su"][None]).astype(jnp.bfloat16)                   # (B, Cx, N)

    sim = jnp.einsum("bmq,bmk->bqk", fx, fy,
                     preferred_element_type=jnp.float32)                 # (B, N, N)
    p = jax.nn.softmax(sim, axis=-1).astype(jnp.bfloat16)
    attn = jnp.einsum("bck,bqk->bcq", fv, p,
                      preferred_element_type=jnp.float32)                # (B, Cx, N)
    out = xb.astype(jnp.float32) + attn + params["b_up"][None]
    return out.reshape(B, Cx, H, W)


# ----------------------------------- main ------------------------------------

if __name__ == "__main__":
    B, Cx, Cy, mid, H, W = 2, 4, 6, 8, 16, 16          # N = 256 -> one q tile

    key = jax.random.PRNGKey(0)
    kx, ky, kp = jax.random.split(key, 3)
    x = jax.random.normal(kx, (B, Cx, H, W), jnp.float32)
    y = jax.random.normal(ky, (B, Cy, H, W), jnp.float32)
    params = make_params(kp, Cx, Cy, mid, scale=False)

    out = bca_forward(x, y, params, tq=512, bf16_probs=False)
    out = jax.block_until_ready(out)

    ref = bca_reference(x, y, params)
    assert out.shape == (B, Cx, H, W)
    max_err = float(jnp.max(jnp.abs(out - ref)))
    assert jnp.allclose(out, ref, atol=1e-2, rtol=1e-2), (
        f"mismatch vs reference (max abs err {max_err})")

    print("KERNEL_OK")
</pallas_src>

<mosaic_0001>
module attributes {stable_mosaic.version = 11 : i64} {
  func.func @bca_kernel(%arg0: i32, %arg1: i32, %arg2: memref<1x4x256xbf16, #tpu.memory_space<vmem>>, %arg3: memref<1x8x256xbf16, #tpu.memory_space<vmem>>, %arg4: memref<1x8x256xbf16, #tpu.memory_space<vmem>>, %arg5: memref<1x5x256xbf16, #tpu.memory_space<vmem>>, %arg6: memref<4x1xf32, #tpu.memory_space<vmem>>, %arg7: memref<1x4x256xf32, #tpu.memory_space<vmem>>) attributes {dimension_semantics = [#tpu.dimension_semantics<parallel>, #tpu.dimension_semantics<parallel>], iteration_bounds = array<i64: 2, 1>, scalar_prefetch = 0 : i64, scratch_operands = 0 : i64, tpu.core_type = #tpu.core_type<tc>, window_params = [{transform_indices = @transform_0, window_bounds = array<i64: 1, 4, 256>}, {transform_indices = @transform_1, window_bounds = array<i64: 1, 8, 256>}, {transform_indices = @transform_2, window_bounds = array<i64: 1, 8, 256>}, {transform_indices = @transform_3, window_bounds = array<i64: 1, 5, 256>}, {pipeline_mode = #tpu.pipeline_mode<synchronous>, transform_indices = @transform_4, window_bounds = array<i64: 4, 1>}, {transform_indices = @transform_5, window_bounds = array<i64: 1, 4, 256>}]} {
    %c0 = arith.constant 0 : index
    %c0_0 = arith.constant 0 : index
    %c0_1 = arith.constant 0 : index
    %0 = vector.load %arg4[%c0, %c0_0, %c0_1] : memref<1x8x256xbf16, #tpu.memory_space<vmem>>, vector<1x8x256xbf16>
    %1 = vector.shape_cast %0 : vector<1x8x256xbf16> to vector<8x256xbf16>
    %c0_2 = arith.constant 0 : index
    %c0_3 = arith.constant 0 : index
    %c0_4 = arith.constant 0 : index
    %2 = vector.load %arg3[%c0_2, %c0_3, %c0_4] : memref<1x8x256xbf16, #tpu.memory_space<vmem>>, vector<1x8x256xbf16>
    %3 = vector.shape_cast %2 : vector<1x8x256xbf16> to vector<8x256xbf16>
    %cst = arith.constant dense<0.000000e+00> : vector<256x256xf32>
    %4 = tpu.matmul %1, %3, %cst {dimension_numbers = #tpu.dot_dimension_numbers<[0], [0], [1], [1], [0, 1, 1, 1], [], []>} : vector<8x256xbf16>, vector<8x256xbf16>, vector<256x256xf32> -> vector<256x256xf32>
    %cst_5 = arith.constant dense<0xFF800000> : vector<256xf32>
    %5 = vector.multi_reduction <maximumf>, %4, %cst_5 [0] : vector<256x256xf32> to vector<256xf32>
    %6 = vector.shape_cast %5 : vector<256xf32> to vector<1x256xf32>
    %7 = vector.broadcast %6 : vector<1x256xf32> to vector<256x256xf32>
    %8 = arith.subf %4, %7 : vector<256x256xf32>
    %9 = math.exp %8 : vector<256x256xf32>
    %10 = arith.truncf %9 : vector<256x256xf32> to vector<256x256xbf16>
    %c0_6 = arith.constant 0 : index
    %c0_7 = arith.constant 0 : index
    %c0_8 = arith.constant 0 : index
    %11 = vector.load %arg5[%c0_6, %c0_7, %c0_8] : memref<1x5x256xbf16, #tpu.memory_space<vmem>>, vector<1x5x256xbf16>
    %12 = vector.shape_cast %11 : vector<1x5x256xbf16> to vector<5x256xbf16>
    %cst_9 = arith.constant dense<0.000000e+00> : vector<5x256xf32>
    %13 = tpu.matmul %12, %10, %cst_9 {dimension_numbers = #tpu.dot_dimension_numbers<[1], [0], [0], [1], [0, 0, 1, 1], [], []>} : vector<5x256xbf16>, vector<256x256xbf16>, vector<5x256xf32> -> vector<5x256xf32>
    %14 = vector.extract_strided_slice %13 {offsets = [4, 0], sizes = [1, 256], strides = [1, 1]} : vector<5x256xf32> to vector<1x256xf32>
    %15 = tpu.reciprocal %14 {approx = true} : vector<1x256xf32> -> vector<1x256xf32>
    %16 = vector.extract_strided_slice %13 {offsets = [0, 0], sizes = [4, 256], strides = [1, 1]} : vector<5x256xf32> to vector<4x256xf32>
    %17 = vector.broadcast %15 : vector<1x256xf32> to vector<4x256xf32>
    %18 = arith.mulf %16, %17 : vector<4x256xf32>
    %c0_10 = arith.constant 0 : index
    %c0_11 = arith.constant 0 : index
    %19 = vector.load %arg6[%c0_10, %c0_11] : memref<4x1xf32, #tpu.memory_space<vmem>>, vector<4x1xf32>
    %20 = vector.broadcast %19 : vector<4x1xf32> to vector<4x256xf32>
    %21 = arith.addf %18, %20 : vector<4x256xf32>
    %c0_12 = arith.constant 0 : index
    %c0_13 = arith.constant 0 : index
    %c0_14 = arith.constant 0 : index
    %22 = vector.load %arg2[%c0_12, %c0_13, %c0_14] : memref<1x4x256xbf16, #tpu.memory_space<vmem>>, vector<1x4x256xbf16>
    %23 = vector.shape_cast %22 : vector<1x4x256xbf16> to vector<4x256xbf16>
    %24 = arith.extf %23 : vector<4x256xbf16> to vector<4x256xf32>
    %25 = arith.addf %24, %21 : vector<4x256xf32>
    %c0_15 = arith.constant 0 : index
    %c0_16 = arith.constant 0 : index
    %c0_17 = arith.constant 0 : index
    %26 = vector.load %arg7[%c0_15, %c0_16, %c0_17] : memref<1x4x256xf32, #tpu.memory_space<vmem>>, vector<1x4x256xf32>
    %27 = vector.shape_cast %26 : vector<1x4x256xf32> to vector<4x256xf32>
    %28 = vector.shape_cast %25 : vector<4x256xf32> to vector<1x4x256xf32>
    tpu.vector_store %arg7[%c0_15, %c0_16, %c0_17], %28 {strides = array<i32>} : memref<1x4x256xf32, #tpu.memory_space<vmem>>, vector<1x4x256xf32>,
    return
  }
  func.func @transform_0(%arg0: i32, %arg1: i32) -> (i32, i32, i32) {
    %c0_i32 = arith.constant 0 : i32
    %c0_i32_0 = arith.constant 0 : i32
    return %arg0, %c0_i32, %arg1 : i32, i32, i32
  }
  func.func @transform_1(%arg0: i32, %arg1: i32) -> (i32, i32, i32) {
    %c0_i32 = arith.constant 0 : i32
    %c0_i32_0 = arith.constant 0 : i32
    return %arg0, %c0_i32, %arg1 : i32, i32, i32
  }
  func.func @transform_2(%arg0: i32, %arg1: i32) -> (i32, i32, i32) {
    %c0_i32 = arith.constant 0 : i32
    %c0_i32_0 = arith.constant 0 : i32
    %c0_i32_1 = arith.constant 0 : i32
    return %arg0, %c0_i32, %c0_i32_0 : i32, i32, i32
  }
  func.func @transform_3(%arg0: i32, %arg1: i32) -> (i32, i32, i32) {
    %c0_i32 = arith.constant 0 : i32
    %c0_i32_0 = arith.constant 0 : i32
    %c0_i32_1 = arith.constant 0 : i32
    return %arg0, %c0_i32, %c0_i32_0 : i32, i32, i32
  }
  func.func @transform_4(%arg0: i32, %arg1: i32) -> (i32, i32) {
    %c0_i32 = arith.constant 0 : i32
    %c0_i32_0 = arith.constant 0 : i32
    %c0_i32_1 = arith.constant 0 : i32
    return %c0_i32, %c0_i32_0 : i32, i32
  }
  func.func @transform_5(%arg0: i32, %arg1: i32) -> (i32, i32, i32) {
    %c0_i32 = arith.constant 0 : i32
    %c0_i32_0 = arith.constant 0 : i32
    return %arg0, %c0_i32, %arg1 : i32, i32, i32
  }
}

</mosaic_0001>

<bundles_post_ra>
// kernel: tpu_custom_call.1
= control target key start
LH: loop header
LB: loop body
LE: loop exit
PB: predicated region body
PF: predicated region fallthrough
CT: control target
= control target key end

     0   :  { %10 = vsyncpa [#allocation3], 0  ;;  %s2319_s0 = inlined_call_operand.vmem [shape: bf16[2,4,256], index: 0, kind: input, shape index: {}]   ;;  %s2320_s1 = inlined_call_operand.vmem [shape: bf16[2,8,256], index: 1, kind: input, shape index: {}]   ;;  %s2321_s2 = inlined_call_operand.hbm [shape: bf16[2,8,256], index: 2, kind: input, shape index: {}]   ;;  %s2322_s3 = inlined_call_operand.vmem [shape: bf16[2,5,256], index: 3, kind: input, shape index: {}]   ;;  %s2323_s4 = inlined_call_operand.vmem [shape: f32[4,1], index: 4, kind: input, shape index: {}]   ;;  %s2324_s5 = inlined_call_operand.hbm [shape: f32[2,4,256], index: 5, kind: output, shape index: {}]  }
   0x1   :  { %12 = vsyncpa [#allocation3 + $0x1], 0 }
   0x2   :  { %13 = vsyncpa [#allocation4], 0 }
   0x3   :  { %15 = vsyncpa [#allocation4 + $0x1], 0  ;;  %s1564_s18 = smov 0   ;;  %s1566_s19 = smov 0  }
   0x4   :  { %s1568_s20 = smov 0   ;;  %s1570_s21 = smov 0  }
   0x5   :  { %s1572_s22 = smov 0   ;;  %s1574_s23 = smov 0  }
   0x6 LB: > { %s1165_s24 = sadd.s32 4294967295, %s1529_s23   ;;  %s1166_s25 = sadd.s32 4294967294, %s1529_s23   ;;  %s1529_s23 = sphi %s1574_s23, %s21_s23   ;;  %s1525_s22 = sphi %s1572_s22, %s2505_s22   ;;  %s1521_s21 = sphi %s1570_s21, %s2504_s21   ;;  %s1517_s20 = sphi %s1568_s20, %s2503_s20   ;;  %s1513_s19 = sphi %s1566_s19, %s2502_s19   ;;  %s1509_s18 = sphi %s1564_s18, %s2501_s18  }
   0x7   : > { %s33_s26 = sadd.s32 1, %s1525_s22  ;;  %s96_s27 = sadd.s32 1, %s1517_s20 }
   0x8   : > { %p35_p0 = scmp.ge.s32.totalorder %s33_s26, 2  ;;  %p103_p1 = scmp.ne.s32.totalorder %s1517_s20, %s1513_s19 }
   0x9   : > { %p104_p2 = scmp.eq.s32.totalorder %s1529_s23, 0  ;;  %p109_p3 = scmp.ne.s32.totalorder %s1513_s19, %s1509_s18 }
   0xa   : > { %s2507_s26 = smov (%p35_p0, %s33_s26), 0  ;;  %p110_p5 = scmp.eq.s32.totalorder %s1165_s24, 0 }
   0xb   : > { %p1605_p4 = por %p104_p2, %p103_p1  ;;  %s93_s29 = ssub.s32 %s1525_s22, %s2507_s26 }
   0xc   : > { %p182_p6 = scmp.eq.s32.totalorder %s1165_s24, 1  ;;  %p94_p7 = scmp.eq.s32.totalorder %s93_s29, 0 }
   0xd   : > { %p1611_p8 = por %p110_p5, %p109_p3  ;;  %p188_p10 = scmp.eq.s32.totalorder %s1166_s25, 1 }
   0xe   : > { %p1615_p9 = por %p182_p6, %p103_p1  ;;  %p1226_p13 = scmp.lt.s32.totalorder %s1529_s23, 2 }
   0xf   : > { %s1620_s7 = scalar_select %p94_p7, %s1517_s20, %s96_s27  }
  0x10   : > { %s2377_s6 = scalar_select %p1615_p9, 1, 0 }
  0x11   : > { %p1622_p11 = por %p188_p10, %p109_p3  ;;  %s237_s9 = sand.u32 1, %s1517_s20  }
  0x12   : > { %s1169_s10 = sshll.u32 %s237_s9, 3  ;;  %s1209_s11 = sshll.u32 %s1525_s22, 7 }
  0x13   : > { %s2378_s8 = scalar_select %p1622_p11, 1, 0 }
  0x14   : > { %s1633_s14 = scalar_lea.hbm %s2321_s2, %s1209_s11  ;;  %s241_s15 = scalar_lea.vmem [#allocation2], %s1169_s10 }
  0x15   : > { %s249_s16 = sshll.u32 %s241_s15, 4  ;;  %p1639_p0 = pnand %p1226_p13, %p1605_p4  ;;  %s1635_s16 = int_to_ptr.vmem [resolvable:$true] %s249_s16 }
  0x16   : > { %s238_s24 = scalar_lea.sflag [#allocation3], %s237_s9  ;;  %s1417_s25 = scalar_lea.hbm %s1633_s14, 128 }
  0x17   : > { %p1418_p3 = scmp.ne.s32.totalorder %s1633_s14, %s1417_s25  ;;  %p1419_p5 = pneg %p1639_p0 }
  0x18   : > { %s1422_s28 = scalar_lea.hbm %s2321_s2, 256  ;;  %p1423_p4 = scmp.lt.u32.totalorder %s1633_s14, %s2321_s2 }
  0x19   : > { %p1420_p6 = pnand %p1419_p5, %p1418_p3  ;;  %p1424_p10 = scmp.lt.u32.totalorder %s1422_s28, %s1417_s25 }
  0x1a   : > { %p1426_p12 = scmp.lt.u32.totalorder %s1417_s25, %s1633_s14 }
  0x1b   : > { %p1421_p7 = pneg %p1420_p6  ;;  %p1425_p13 = por %p1424_p10, %p1423_p4 }
  0x1d   : > { %p1427_p1 = por %p1426_p12, %p1425_p13 }
  0x1f   : > { %p1428_p2 = pnand %p1427_p1, %p1421_p7 }
  0x21   : > { %1431 = shalt.err (!%p1428_p2)
}
  0x22   : > { %s1432_s9 = scalar_lea.vmem %s1635_s16, 128  ;;  %s1531_s12 = smov [#allocation2]  }
  0x23   : > { %p1433_p3 = scmp.ne.s32.totalorder %s1635_s16, %s1432_s9  ;;  %s1437_s13 = sshll.u32 %s1531_s12, 4  ;;  %s1438_s13 = int_to_ptr.vmem [resolvable:$false] %s1437_s13 }
  0x24   : > { %s1439_s15 = scalar_lea.vmem %s1438_s13, 256  ;;  %p1440_p9 = scmp.lt.s32.totalorder %s1635_s16, %s1438_s13 }
  0x25   : > { %p1435_p6 = pnand %p1433_p3, %p1419_p5  ;;  %p1441_p4 = scmp.lt.s32.totalorder %s1439_s15, %s1432_s9 }
  0x27   : > { %p1436_p11 = pneg %p1435_p6  ;;  %p1442_p10 = por %p1441_p4, %p1440_p9 }
  0x29   : > { %p1443_p12 = pnand %p1442_p10, %p1436_p11 }
  0x2b   : > { %1446 = shalt.err (!%p1443_p12)
}
  0x2c   : > { %1221 = dma.hbm_to_vmem [thread:$0]  (!%p1639_p0), %s1633_s14, 128, %s1635_s16, %s238_s24  }
  0x2d   : > { %p2380_p1 = scmp.lt.s32.totalorder %s1529_s23, 3  ;;  %p2381_p2 = scmp.ge.s32.totalorder %s1529_s23, 1 }
  0x2f   : > { %p263_p5 = pnand %p2381_p2, %p2380_p1 }
  0x31   : > { %266 = sbr.rel (%p263_p5) target bundleno = 858 (0x35a), region = 40 }
  0x38   : > { %s1675_s25 = sand.u32 1, %s1513_s19  }
  0x39   : > { %s1173_s27 = sshll.u32 %s1675_s25, 3  ;;  %s269_s29 = scalar_lea.sflag [#allocation3], %s1675_s25 }
  0x3a   : > { %s272_s17 = scalar_lea.vmem [#allocation2], %s1173_s27 }
  0x3b   : > { %1500 = dma.done.wait (%p1611_p8), %s269_s29, 128  }
  0x3c   : > { %1502 = vsyncadd (%p1611_p8), %s269_s29, 4294967168  ;;  %p323_p9 = scmp.lt.s32.totalorder %s1521_s21, 1  ;;  %v1532_v0 = vmov 0   ;;  %v349_v1 = vld [vmem:[%s272_s17] sm:$0xff]  ;;  %vm444_vm0 = vcmask 1043456   ;;  %vm395_vm1 = vcmask 64512  }
  0x3d   : > { %483 = vmatprep.mubr.bf16.mxu0 %v1532_v0  ;;  %1277 = vset.pattern.permute.xlu1 %v1532_v0  ;;  %v1181_v3 = vcombine.low %v349_v1, %v349_v1  ;;  %v1182_v7 = vcombine.high %v349_v1, %v349_v1  ;;  %s1213_s24 = sshll.u32 %s1521_s21, 7  ;;  %p2498_p11 = scmp.ne.s32.totalorder %s2377_s6, 0 }
  0x3e   : > { %s1689_s14 = scalar_select %p323_p9, %s1521_s21, 1 }
  0x3f   : > { %358 = vxpose.xlu0.c.b16.start.end [1/1] (short) %v1181_v3, 128  ;;  %s2270_s11 = scalar_lea.hbm %s2324_s5, %s1213_s24  ;;  %s1533_s21 = smov [#allocation5]  }
  0x40   : > { %s1211_s16 = sshll.u32 %s1689_s14, 3  ;;  %s1210_s15 = sshll.u32 %s1689_s14, 2 }
  0x41   : > { %s340_s10 = scalar_lea.vmem %s2320_s1, %s1211_s16  ;;  %s346_s9 = scalar_lea.vmem %s2322_s3, %s1211_s16 }
  0x42   : > { %v350_v2 = vld [vmem:[%s340_s10] sm:$0xff]  ;;  %s330_s16 = scalar_lea.vmem %s2319_s0, %s1210_s15  ;;  %s321_s14 = scalar_lea.vmem [#allocation5], %s1173_s27 }
  0x43   : > { %v1184_v4 = vcombine.high %v350_v2, %v350_v2  ;;  %v1183_v5 = vcombine.low %v350_v2, %v350_v2  ;;  %s1036_s28 = sshll.u32 %s321_s14, 4  ;;  %s1451_s27 = sshll.u32 %s1533_s21, 4  ;;  %s2272_s28 = int_to_ptr.vmem [resolvable:$true] %s1036_s28  ;;  %s1452_s27 = int_to_ptr.vmem [resolvable:$false] %s1451_s27 }
  0x44   : > { %s1447_s12 = scalar_lea.vmem %s2272_s28, 128  ;;  %s1453_s13 = scalar_lea.vmem %s1452_s27, 256 }
  0x45   : > { %1185 = vmatprep.subr.msk.bf16.mxu0 %vm444_vm0, %v1184_v4  ;;  %v446_v6 = vsel %vm444_vm0, %v1183_v5, 0  ;;  %p1448_p8 = scmp.ne.s32.totalorder %s2272_s28, %s1447_s12  ;;  %p1454_p13 = scmp.lt.s32.totalorder %s2272_s28, %s1452_s27 }
  0x46   : > { %452 = vmatpush1.bf16.msra.mxu0 %v446_v6  ;;  %p1455_p3 = scmp.lt.s32.totalorder %s1453_s13, %s1447_s12 }
  0x47   : > { %p1449_p0 = pnand %p1448_p8, %p2498_p11 }
  0x48   : > { %p1456_p6 = por %p1455_p3, %p1454_p13 }
  0x49   : > { %p1450_p7 = pneg %p1449_p0 }
  0x4b   : > { %p1457_p4 = pnand %p1456_p6, %p1450_p7 }
  0x5c   : > { %374 = vxpose.xlu0.c.b16.start.end [1/1] (short) %v1182_v7, 128 }
  0x65   : > { %1278 = vset.pattern.permute.xlu0 %v1532_v0 }
  0xa5   : > { %v366_v8 = vpop.trf.xlu0 }
  0xa6   : > { %1186 = vmatmul.mubr.msk.bf16.vlgmr.msra.gmra.mrb[0].mxu0 %vm395_vm1, %v366_v8 }
  0xa7   : > { %493 = vmatprep.mubr.bf16.mxu0 %v1532_v0 }
  0xa9   : > { %v367_v9 = vpop.trf.xlu0 }
  0xad   : > { %v368_v10 = vpop.trf.xlu0 }
  0xae   : > { %1187 = vmatmul.mubr.msk.bf16.gmra.mrb[4].mxu0 %vm395_vm1, %v367_v9 }
  0xaf   : > { %503 = vmatprep.mubr.bf16.mxu0 %v1532_v0 }
  0xb1   : > { %v369_v11 = vpop.trf.xlu0 }
  0xb5   : > { %v370_v12 = vpop.trf.xlu0 }
  0xb6   : > { %1188 = vmatmul.mubr.msk.bf16.gmra.mrb[8].mxu0 %vm395_vm1, %v368_v10 }
  0xb7   : > { %513 = vmatprep.mubr.bf16.mxu0 %v1532_v0 }
  0xb9   : > { %v371_v13 = vpop.trf.xlu0 }
  0xbd   : > { %v372_v14 = vpop.trf.xlu0 }
  0xbe   : > { %1189 = vmatmul.mubr.msk.bf16.gmra.mrb[12].mxu0 %vm395_vm1, %v369_v11 }
  0xbf   : > { %523 = vmatprep.mubr.bf16.mxu0 %v1532_v0 }
  0xc1   : > { %v373_v15 = vpop.trf.xlu0 }
  0xc5   : > { %v382_v16 = vpop.trf.xlu0 }
  0xc6   : > { %1190 = vmatmul.mubr.msk.bf16.gmra.mrb[16].mxu0 %vm395_vm1, %v370_v12 }
  0xc7   : > { %533 = vmatprep.mubr.bf16.mxu0 %v1532_v0 }
  0xc9   : > { %v383_v17 = vpop.trf.xlu0 }
  0xcd   : > { %v384_v18 = vpop.trf.xlu0 }
  0xce   : > { %1191 = vmatmul.mubr.msk.bf16.gmra.mrb[20].mxu0 %vm395_vm1, %v371_v13 }
  0xcf   : > { %543 = vmatprep.mubr.bf16.mxu0 %v1532_v0 }
  0xd1   : > { %v385_v19 = vpop.trf.xlu0 }
  0xd5   : > { %v386_v20 = vpop.trf.xlu0 }
  0xd6   : > { %1192 = vmatmul.mubr.msk.bf16.gmra.mrb[24].mxu0 %vm395_vm1, %v372_v14 }
  0xd7   : > { %553 = vmatprep.mubr.bf16.mxu0 %v1532_v0 }
  0xd9   : > { %v387_v21 = vpop.trf.xlu0 }
  0xdd   : > { %v388_v22 = vpop.trf.xlu0 }
  0xde   : > { %1193 = vmatmul.mubr.msk.bf16.gmra.mrb[28].mxu0 %vm395_vm1, %v373_v15 }
  0xdf   : > { %563 = vmatprep.mubr.bf16.mxu0 %v1532_v0 }
  0xe1   : > { %v389_v23 = vpop.trf.xlu0 }
  0xe6   : > { %1194 = vmatmul.mubr.msk.bf16.gmra.mrb[32].mxu0 %vm395_vm1, %v382_v16 }
  0xe7   : > { %573 = vmatprep.mubr.bf16.mxu0 %v1532_v0 }
  0xee   : > { %1195 = vmatmul.mubr.msk.bf16.gmra.mrb[36].mxu0 %vm395_vm1, %v383_v17 }
  0xef   : > { %583 = vmatprep.mubr.bf16.mxu0 %v1532_v0 }
  0xf6   : > { %1196 = vmatmul.mubr.msk.bf16.gmra.mrb[40].mxu0 %vm395_vm1, %v384_v18 }
  0xf7   : > { %593 = vmatprep.mubr.bf16.mxu0 %v1532_v0 }
  0xfe   : > { %1197 = vmatmul.mubr.msk.bf16.gmra.mrb[44].mxu0 %vm395_vm1, %v385_v19 }
  0xff   : > { %603 = vmatprep.mubr.bf16.mxu0 %v1532_v0 }
 0x106   : > { %1198 = vmatmul.mubr.msk.bf16.gmra.mrb[48].mxu0 %vm395_vm1, %v386_v20 }
 0x107   : > { %613 = vmatprep.mubr.bf16.mxu0 %v1532_v0 }
 0x10e   : > { %1199 = vmatmul.mubr.msk.bf16.gmra.mrb[52].mxu0 %vm395_vm1, %v387_v21 }
 0x10f   : > { %623 = vmatprep.mubr.bf16.mxu0 %v1532_v0 }
 0x116   : > { %1200 = vmatmul.mubr.msk.bf16.gmra.mrb[56].mxu0 %vm395_vm1, %v388_v22 }
 0x117   : > { %633 = vmatprep.mubr.bf16.mxu0 %v1532_v0 }
 0x11e   : > { %1201 = vmatmul.mubr.msk.bf16.gmra.mrb[60].mxu0 %vm395_vm1, %v389_v23 }
 0x179   : > { %v1729_v24 = vpop.f32.mrb[0].mxu0 }
 0x17a   : > { %v1731_v25 = vpop.f32.mrb[1].mxu0 }
 0x17b   : > { %v1733_v26 = vpop.f32.mrb[2].mxu0 }
 0x17c   : > { %v1735_v27 = vpop.f32.mrb[3].mxu0 }
 0x181   : > { %v1737_v28 = vpop.f32.mrb[4].mxu0 }
 0x182   : > { %v644_v29 = vmax.f32 %v1729_v24, %v1737_v28  ;;  %v1741_v30 = vpop.f32.mrb[5].mxu0 }
 0x183   : > { %v681_v31 = vmax.f32 %v1731_v25, %v1741_v30  ;;  %v1745_v32 = vpop.f32.mrb[6].mxu0 }
 0x184   : > { %v645_v33 = vmax.f32 %v1733_v26, %v1745_v32  ;;  %v1749_v34 = vpop.f32.mrb[7].mxu0 }
 0x185   : > { %v682_v35 = vmax.f32 %v1735_v27, %v1749_v34 }
 0x189   : > { %v1753_v36 = vpop.f32.mrb[8].mxu0 }
 0x18a   : > { %v646_v37 = vmax.f32 %v644_v29, %v1753_v36  ;;  %v1756_v38 = vpop.f32.mrb[9].mxu0 }
 0x18b   : > { %v683_v39 = vmax.f32 %v681_v31, %v1756_v38  ;;  %v1759_v40 = vpop.f32.mrb[10].mxu0 }
 0x18c   : > { %v647_v41 = vmax.f32 %v645_v33, %v1759_v40  ;;  %v1762_v42 = vpop.f32.mrb[11].mxu0 }
 0x18d   : > { %v684_v43 = vmax.f32 %v682_v35, %v1762_v42 }
 0x191   : > { %v1765_v44 = vpop.f32.mrb[12].mxu0 }
 0x192   : > { %v648_v45 = vmax.f32 %v646_v37, %v1765_v44  ;;  %v1768_v46 = vpop.f32.mrb[13].mxu0 }
 0x193   : > { %v685_v47 = vmax.f32 %v683_v39, %v1768_v46  ;;  %v1771_v48 = vpop.f32.mrb[14].mxu0 }
 0x194   : > { %v649_v49 = vmax.f32 %v647_v41, %v1771_v48  ;;  %v1774_v50 = vpop.f32.mrb[15].mxu0 }
 0x195   : > { %v686_v51 = vmax.f32 %v684_v43, %v1774_v50 }
 0x199   : > { %v1777_v52 = vpop.f32.mrb[16].mxu0 }
 0x19a   : > { %v650_v53 = vmax.f32 %v648_v45, %v1777_v52  ;;  %v1780_v54 = vpop.f32.mrb[17].mxu0 }
 0x19b   : > { %v687_v55 = vmax.f32 %v685_v47, %v1780_v54  ;;  %v1783_v56 = vpop.f32.mrb[18].mxu0 }
 0x19c   : > { %v651_v57 = vmax.f32 %v649_v49, %v1783_v56  ;;  %v1786_v58 = vpop.f32.mrb[19].mxu0 }
 0x19d   : > { %v688_v59 = vmax.f32 %v686_v51, %v1786_v58 }
 0x1a1   : > { %v1789_v60 = vpop.f32.mrb[20].mxu0 }
 0x1a2   : > { %v652_v61 = vmax.f32 %v650_v53, %v1789_v60  ;;  %v1792_v62 = vpop.f32.mrb[21].mxu0 }
 0x1a3   : > { %2382 = vst [vmem:[#allocation8_spill] sm:$0xff] %v1792_v62  ;;  %v689_v63 = vmax.f32 %v687_v55, %v1792_v62  ;;  %v1795_v0 = vpop.f32.mrb[22].mxu0 }
 0x1a4   : > { %v653_v1 = vmax.f32 %v651_v57, %v1795_v0  ;;  %v1798_v2 = vpop.f32.mrb[23].mxu0 }
 0x1a5   : > { %2383 = vst [vmem:[#allocation9_spill] sm:$0xff] %v1798_v2  ;;  %v690_v3 = vmax.f32 %v688_v59, %v1798_v2 }
 0x1a9   : > { %v1801_v4 = vpop.f32.mrb[24].mxu0 }
 0x1aa   : > { %v654_v5 = vmax.f32 %v652_v61, %v1801_v4  ;;  %v1804_v6 = vpop.f32.mrb[25].mxu0 }
 0x1ab   : > { %2384 = vst [vmem:[#allocation10_spill] sm:$0xff] %v1804_v6  ;;  %v691_v7 = vmax.f32 %v689_v63, %v1804_v6  ;;  %v1807_v8 = vpop.f32.mrb[26].mxu0 }
 0x1ac   : > { %v655_v9 = vmax.f32 %v653_v1, %v1807_v8  ;;  %v1810_v10 = vpop.f32.mrb[27].mxu0 }
 0x1ad   : > { %2385 = vst [vmem:[#allocation11_spill] sm:$0xff] %v1810_v10  ;;  %v692_v11 = vmax.f32 %v690_v3, %v1810_v10 }
 0x1b1   : > { %v1813_v12 = vpop.f32.mrb[28].mxu0 }
 0x1b2   : > { %v656_v13 = vmax.f32 %v654_v5, %v1813_v12  ;;  %v1816_v14 = vpop.f32.mrb[29].mxu0 }
 0x1b3   : > { %2386 = vst [vmem:[#allocation12_spill] sm:$0xff] %v1816_v14  ;;  %v693_v15 = vmax.f32 %v691_v7, %v1816_v14  ;;  %v1819_v16 = vpop.f32.mrb[30].mxu0 }
 0x1b4   : > { %v657_v17 = vmax.f32 %v655_v9, %v1819_v16  ;;  %v1822_v18 = vpop.f32.mrb[31].mxu0 }
 0x1b5   : > { %2387 = vst [vmem:[#allocation13_spill] sm:$0xff] %v1822_v18  ;;  %v694_v19 = vmax.f32 %v692_v11, %v1822_v18 }
 0x1b9   : > { %v1825_v20 = vpop.f32.mrb[32].mxu0 }
 0x1ba   : > { %v658_v21 = vmax.f32 %v656_v13, %v1825_v20  ;;  %v1828_v22 = vpop.f32.mrb[33].mxu0 }
 0x1bb   : > { %2388 = vst [vmem:[#allocation14_spill] sm:$0xff] %v1828_v22  ;;  %v695_v23 = vmax.f32 %v693_v15, %v1828_v22  ;;  %v1831_v29 = vpop.f32.mrb[34].mxu0 }
 0x1bc   : > { %v659_v31 = vmax.f32 %v657_v17, %v1831_v29  ;;  %v1834_v33 = vpop.f32.mrb[35].mxu0 }
 0x1bd   : > { %2389 = vst [vmem:[#allocation15_spill] sm:$0xff] %v1834_v33  ;;  %v696_v35 = vmax.f32 %v694_v19, %v1834_v33 }
 0x1c1   : > { %v1837_v37 = vpop.f32.mrb[36].mxu0 }
 0x1c2   : > { %v660_v39 = vmax.f32 %v658_v21, %v1837_v37  ;;  %v1840_v41 = vpop.f32.mrb[37].mxu0 }
 0x1c3   : > { %2390 = vst [vmem:[#allocation16_spill] sm:$0xff] %v1840_v41  ;;  %v697_v43 = vmax.f32 %v695_v23, %v1840_v41  ;;  %v1843_v45 = vpop.f32.mrb[38].mxu0 }
 0x1c4   : > { %v661_v47 = vmax.f32 %v659_v31, %v1843_v45  ;;  %v1846_v49 = vpop.f32.mrb[39].mxu0 }
 0x1c5   : > { %2391 = vst [vmem:[#allocation17_spill] sm:$0xff] %v1846_v49  ;;  %v698_v51 = vmax.f32 %v696_v35, %v1846_v49 }
 0x1c9   : > { %v1849_v53 = vpop.f32.mrb[40].mxu0 }
 0x1ca   : > { %v662_v55 = vmax.f32 %v660_v39, %v1849_v53  ;;  %v1852_v57 = vpop.f32.mrb[41].mxu0 }
 0x1cb   : > { %2392 = vst [vmem:[#allocation18_spill] sm:$0xff] %v1852_v57  ;;  %v699_v59 = vmax.f32 %v697_v43, %v1852_v57  ;;  %v1855_v61 = vpop.f32.mrb[42].mxu0 }
 0x1cc   : > { %v663_v63 = vmax.f32 %v661_v47, %v1855_v61  ;;  %v1858_v1 = vpop.f32.mrb[43].mxu0 }
 0x1cd   : > { %2393 = vst [vmem:[#allocation19_spill] sm:$0xff] %v1858_v1  ;;  %v700_v3 = vmax.f32 %v698_v51, %v1858_v1 }
 0x1d1   : > { %v1861_v5 = vpop.f32.mrb[44].mxu0 }
 0x1d2   : > { %v664_v7 = vmax.f32 %v662_v55, %v1861_v5  ;;  %v1864_v9 = vpop.f32.mrb[45].mxu0 }
 0x1d3   : > { %2394 = vst [vmem:[#allocation20_spill] sm:$0xff] %v1864_v9  ;;  %v701_v11 = vmax.f32 %v699_v59, %v1864_v9  ;;  %v1867_v13 = vpop.f32.mrb[46].mxu0 }
 0x1d4   : > { %2395 = vst [vmem:[#allocation21_spill] sm:$0xff] %v1867_v13  ;;  %v665_v15 = vmax.f32 %v663_v63, %v1867_v13  ;;  %v1870_v17 = vpop.f32.mrb[47].mxu0 }
 0x1d5   : > { %2396 = vst [vmem:[#allocation22_spill] sm:$0xff] %v1870_v17  ;;  %v702_v19 = vmax.f32 %v700_v3, %v1870_v17 }
 0x1d9   : > { %v1873_v21 = vpop.f32.mrb[48].mxu0 }
 0x1da   : > { %2397 = vst [vmem:[#allocation23_spill] sm:$0xff] %v1873_v21  ;;  %v666_v23 = vmax.f32 %v664_v7, %v1873_v21  ;;  %v1876_v31 = vpop.f32.mrb[49].mxu0 }
 0x1db   : > { %2398 = vst [vmem:[#allocation24_spill] sm:$0xff] %v1876_v31  ;;  %v703_v35 = vmax.f32 %v701_v11, %v1876_v31  ;;  %v1879_v39 = vpop.f32.mrb[50].mxu0 }
 0x1dc   : > { %2399 = vst [vmem:[#allocation25_spill] sm:$0xff] %v1879_v39  ;;  %v667_v43 = vmax.f32 %v665_v15, %v1879_v39  ;;  %v1882_v47 = vpop.f32.mrb[51].mxu0 }
 0x1dd   : > { %2400 = vst [vmem:[#allocation26_spill] sm:$0xff] %v1882_v47  ;;  %v704_v51 = vmax.f32 %v702_v19, %v1882_v47 }
 0x1e1   : > { %v1885_v55 = vpop.f32.mrb[52].mxu0 }
 0x1e2   : > { %2401 = vst [vmem:[#allocation27_spill] sm:$0xff] %v1885_v55  ;;  %v668_v59 = vmax.f32 %v666_v23, %v1885_v55  ;;  %v1888_v63 = vpop.f32.mrb[53].mxu0 }
 0x1e3   : > { %2402 = vst [vmem:[#allocation28_spill] sm:$0xff] %v1888_v63  ;;  %v705_v3 = vmax.f32 %v703_v35, %v1888_v63  ;;  %v1891_v7 = vpop.f32.mrb[54].mxu0 }
 0x1e4   : > { %2403 = vst [vmem:[#allocation29_spill] sm:$0xff] %v1891_v7  ;;  %v669_v11 = vmax.f32 %v667_v43, %v1891_v7  ;;  %v1894_v31 = vpop.f32.mrb[55].mxu0 }
 0x1e5   : > { %2404 = vst [vmem:[#allocation30_spill] sm:$0xff] %v1894_v31  ;;  %v706_v15 = vmax.f32 %v704_v51, %v1894_v31  ;;  %v1914_v51 = vld [vmem:[%s346_s9] sm:$0x77]  ;;  %s1020_s9 = scalar_lea.sflag [#allocation4], %s1675_s25 }
 0x1e6   : > { %2409 = vst [vmem:[#allocation35_spill] sm:$0xff] %v1914_v51 }
 0x1e9   : > { %v1897_v17 = vpop.f32.mrb[56].mxu0 }
 0x1ea   : > { %2405 = vst [vmem:[#allocation31_spill] sm:$0xff] %v1897_v17  ;;  %v670_v19 = vmax.f32 %v668_v59, %v1897_v17  ;;  %v1900_v47 = vpop.f32.mrb[57].mxu0  ;;  %v1203_v59 = vcombine.high %v1914_v51, %v1914_v51 }
 0x1eb   : > { %2406 = vst [vmem:[#allocation32_spill] sm:$0xff] %v1900_v47  ;;  %v707_v23 = vmax.f32 %v705_v3, %v1900_v47  ;;  %v1903_v9 = vpop.f32.mrb[58].mxu0  ;;  %v1003_v3 = vld [vmem:[%s2323_s4] sm:$0xf] }
 0x1ec   : > { %2407 = vst [vmem:[#allocation33_spill] sm:$0xff] %v1903_v9  ;;  %v671_v35 = vmax.f32 %v669_v11, %v1903_v9  ;;  %v1906_v63 = vpop.f32.mrb[59].mxu0  ;;  %982 = vmatprep.mubr.bf16.mxu1 %v1203_v59  ;;  %1006 = vperm.xlu1 %1277, %v1003_v3  }
 0x1ed   : > { %2408 = vst [vmem:[#allocation34_spill] sm:$0xff] %v1906_v63  ;;  %v708_v43 = vmax.f32 %v706_v15, %v1906_v63 }
 0x1f1   : > { %v1921_v11 = vpop.f32.mrb[60].mxu0 }
 0x1f2   : > { %2410 = vst [vmem:[#allocation36_spill] sm:$0xff] %v1921_v11  ;;  %v672_v47 = vmax.f32 %v670_v19, %v1921_v11  ;;  %v1924_v31 = vpop.f32.mrb[61].mxu0  ;;  %v2429_v11 = vld [vmem:[#allocation32_spill] sm:$0xff] }
 0x1f3   : > { %v709_v1 = vmax.f32 %v707_v23, %v1924_v31  ;;  %v639_v15 = vpop.f32.mrb[62].mxu0 }
 0x1f4   : > { %v673_v63 = vmax.f32 %v671_v35, %v639_v15  ;;  %v641_v57 = vpop.f32.mrb[63].mxu0  ;;  %v2430_v9 = vld [vmem:[#allocation34_spill] sm:$0xff] }
 0x1f5   : > { %v710_v49 = vmax.f32 %v708_v43, %v641_v57 }
 0x1f6   : > { %v674_v41 = vmax.f32 %v672_v47, %v673_v63  ;;  %v2418_v47 = vld [vmem:[#allocation15_spill] sm:$0xff] }
 0x1f7   : > { %v711_v51 = vmax.f32 %v709_v1, %v710_v49 }
 0x1f8   : > { %v675_v33 = vrot.slane %v674_v41, 4 }
 0x1f9   : > { %v712_v22 = vrot.slane %v711_v51, 4 }
 0x1fa   : > { %v676_v18 = vmax.f32 %v674_v41, %v675_v33  ;;  %v2425_v33 = vld [vmem:[#allocation24_spill] sm:$0xff] }
 0x1fb   : > { %v713_v14 = vmax.f32 %v711_v51, %v712_v22  ;;  %v2424_v22 = vld [vmem:[#allocation22_spill] sm:$0xff] }
 0x1fc   : > { %v677_v59 = vrot.slane %v676_v18, 2 }
 0x1fd   : > { %v714_v3 = vrot.slane %v713_v14, 2 }
 0x1fe   : > { %v678_v10 = vmax.f32 %v676_v18, %v677_v59  ;;  %v2420_v18 = vld [vmem:[#allocation17_spill] sm:$0xff] }
 0x1ff   : > { %v715_v6 = vmax.f32 %v713_v14, %v714_v3 }
 0x200   : > { %v679_v2 = vrot.slane %v678_v10, 1 }
 0x201   : > { %v716_v62 = vrot.slane %v715_v6, 1 }
 0x202   : > { %v1927_v19 = vmax.f32 %v678_v10, %v679_v2  ;;  %v2421_v10 = vld [vmem:[#allocation18_spill] sm:$0xff]  ;;  %v2422_v2 = vld [vmem:[#allocation19_spill] sm:$0xff] }
 0x203   : > { %v1964_v1 = vmax.f32 %v715_v6, %v716_v62 }
 0x204   : > { %v780_v23 = vsub.f32 %v639_v15, %v1927_v19  ;;  %v2431_v7 = vsub.f32 %v1729_v24, %v1927_v19  ;;  %v2432_v39 = vsub.f32 %v1733_v26, %v1927_v19  ;;  %v2433_v21 = vsub.f32 %v1737_v28, %v1927_v19 }
 0x205   : > { %v781_v6 = vsub.f32 %v641_v57, %v1964_v1  ;;  %v719_v43 = vsub.f32 %v1731_v25, %v1964_v1  ;;  %v721_v51 = vsub.f32 %v1735_v27, %v1964_v1  ;;  %v723_v15 = vsub.f32 %v1741_v30, %v1964_v1  ;;  %v2415_v25 = vld [vmem:[#allocation12_spill] sm:$0xff]  ;;  %v2416_v27 = vld [vmem:[#allocation13_spill] sm:$0xff]  ;;  %v2417_v30 = vld [vmem:[#allocation14_spill] sm:$0xff] }
 0x206   : > { %v725_v59 = vsub.f32 %v1749_v34, %v1964_v1  ;;  %v727_v3 = vsub.f32 %v1756_v38, %v1964_v1  ;;  %v906_v63 = vmul.f32 1.442695, %v780_v23  ;;  %v729_v62 = vsub.f32 %v1762_v42, %v1964_v1  ;;  %v2411_v34 = vld [vmem:[#allocation8_spill] sm:$0xff]  ;;  %v2412_v38 = vld [vmem:[#allocation9_spill] sm:$0xff]  ;;  %v2413_v42 = vld [vmem:[#allocation10_spill] sm:$0xff] }
 0x207   : > { %v731_v57 = vsub.f32 %v1768_v46, %v1964_v1  ;;  %v908_v41 = vmul.f32 1.442695, %v781_v6  ;;  %v2414_v46 = vld [vmem:[#allocation11_spill] sm:$0xff]  ;;  %v2419_v6 = vld [vmem:[#allocation16_spill] sm:$0xff]  ;;  %v2426_v23 = vld [vmem:[#allocation26_spill] sm:$0xff]  ;;  %v2434_v14 = vsub.f32 %v1745_v32, %v1927_v19  ;;  %v2436_v24 = vsub.f32 %v1759_v40, %v1927_v19 }
 0x208   : > { %1285 = vpow2.f32 %v906_v63  ;;  %v782_v55 = vmul.f32 1.442695, %v2431_v7  ;;  %v786_v49 = vmul.f32 1.442695, %v2432_v39  ;;  %v790_v35 = vmul.f32 1.442695, %v2433_v21 }
 0x209   : > { %1287 = vpow2.f32 %v908_v41  ;;  %v794_v13 = vmul.f32 1.442695, %v2434_v14  ;;  %v2435_v63 = vsub.f32 %v1753_v36, %v1927_v19  ;;  %v802_v7 = vmul.f32 1.442695, %v2436_v24 }
 0x20a   : > { %1289 = vpow2.f32 %v782_v55  ;;  %v2437_v26 = vsub.f32 %v1765_v44, %v1927_v19  ;;  %v2438_v21 = vsub.f32 %v1771_v48, %v1927_v19  ;;  %v2439_v36 = vsub.f32 %v1777_v52, %v1927_v19 }
 0x20b   : > { %v798_v17 = vmul.f32 1.442695, %v2435_v63  ;;  %1291 = vpow2.f32 %v786_v49  ;;  %v2440_v40 = vsub.f32 %v1783_v56, %v1927_v19  ;;  %v788_v49 = vmul.f32 1.442695, %v721_v51 }
 0x20c   : > { %v806_v28 = vmul.f32 1.442695, %v2437_v26  ;;  %1293 = vpow2.f32 %v790_v35  ;;  %v810_v32 = vmul.f32 1.442695, %v2438_v21  ;;  %v814_v39 = vmul.f32 1.442695, %v2439_v36 }
 0x20d   : > { %1295 = vpow2.f32 %v794_v13  ;;  %v818_v55 = vmul.f32 1.442695, %v2440_v40  ;;  %v784_v35 = vmul.f32 1.442695, %v719_v43  ;;  %v792_v13 = vmul.f32 1.442695, %v723_v15 }
 0x20e   : > { %1297 = vpow2.f32 %v798_v17  ;;  %v796_v14 = vmul.f32 1.442695, %v725_v59  ;;  %v800_v17 = vmul.f32 1.442695, %v727_v3  ;;  %v804_v56 = vmul.f32 1.442695, %v729_v62 }
 0x20f   : > { %1299 = vpow2.f32 %v802_v7  ;;  %v808_v24 = vmul.f32 1.442695, %v731_v57  ;;  %v2441_v43 = vsub.f32 %v1774_v50, %v1964_v1  ;;  %v2442_v59 = vsub.f32 %v1780_v54, %v1964_v1 }
 0x210   : > { %1301 = vpow2.f32 %v806_v28  ;;  %v2443_v62 = vsub.f32 %v1786_v58, %v1964_v1  ;;  %v2444_v50 = vsub.f32 %v1789_v60, %v1927_v19  ;;  %v2445_v54 = vsub.f32 %v2411_v34, %v1964_v1 }
 0x211   : > { %1303 = vpow2.f32 %v810_v32  ;;  %v812_v51 = vmul.f32 1.442695, %v2441_v43  ;;  %v816_v3 = vmul.f32 1.442695, %v2442_v59  ;;  %v2446_v58 = vsub.f32 %v1795_v0, %v1927_v19 }
 0x212   : > { %v2087_v44 = vpop.eup %1285  ;;  %1305 = vpow2.f32 %v814_v39  ;;  %v820_v57 = vmul.f32 1.442695, %v2443_v62  ;;  %v822_v21 = vmul.f32 1.442695, %v2444_v50  ;;  %v824_v36 = vmul.f32 1.442695, %v2445_v54 }
 0x213   : > { %v2089_v48 = vpop.eup %1287  ;;  %1307 = vpow2.f32 %v818_v55  ;;  %v826_v40 = vmul.f32 1.442695, %v2446_v58  ;;  %v2447_v55 = vsub.f32 %v2412_v38, %v1964_v1  ;;  %v2455_v58 = vsub.f32 %v2416_v27, %v1964_v1 }
 0x214   : > { %v1290_v52 = vpop.eup %1289  ;;  %1309 = vpow2.f32 %v784_v35 }
 0x215   : > { %v1292_v41 = vpop.eup %1291  ;;  %1311 = vpow2.f32 %v788_v49  ;;  %v828_v60 = vmul.f32 1.442695, %v2447_v55 }
 0x216   : > { %v2091_v63 = vpop.eup %1293  ;;  %1313 = vpow2.f32 %v792_v13  ;;  %v910_v35 = vpack.c.bf16 %v1292_v41, %v1290_v52  ;;  %v2449_v41 = vsub.f32 %v2413_v42, %v1964_v1 }
 0x217   : > { %v2093_v7 = vpop.eup %1295  ;;  %1315 = vpow2.f32 %v796_v14 }
 0x218   : > { %v2098_v15 = vpop.eup %1297  ;;  %1317 = vpow2.f32 %v800_v17  ;;  %v912_v13 = vpack.c.bf16 %v2093_v7, %v2091_v63  ;;  %v2448_v17 = vsub.f32 %v1801_v4, %v1927_v19  ;;  %v832_v63 = vmul.f32 1.442695, %v2449_v41 }
 0x219   : > { %v2103_v26 = vpop.eup %1299  ;;  %1319 = vpow2.f32 %v804_v56  ;;  %v2450_v7 = vsub.f32 %v1807_v8, %v1927_v19  ;;  %v2451_v4 = vsub.f32 %v2414_v46, %v1964_v1  ;;  %v2453_v8 = vsub.f32 %v2415_v25, %v1964_v1 }
 0x21a   : > { %v2108_v28 = vpop.eup %1301  ;;  %1321 = vpow2.f32 %v808_v24  ;;  %v914_v34 = vpack.c.bf16 %v2103_v26, %v2098_v15  ;;  %v830_v56 = vmul.f32 1.442695, %v2448_v17  ;;  %v2452_v26 = vsub.f32 %v1813_v12, %v1927_v19 }
 0x21b   : > { %v2113_v32 = vpop.eup %1303  ;;  %1323 = vpow2.f32 %v812_v51  ;;  %v834_v43 = vmul.f32 1.442695, %v2450_v7  ;;  %v836_v59 = vmul.f32 1.442695, %v2451_v4  ;;  %v840_v50 = vmul.f32 1.442695, %v2453_v8 }
 0x21c   : > { %v2118_v39 = vpop.eup %1305  ;;  %1325 = vpow2.f32 %v816_v3  ;;  %v916_v14 = vpack.c.bf16 %v2113_v32, %v2108_v28  ;;  %v838_v62 = vmul.f32 1.442695, %v2452_v26  ;;  %v2454_v46 = vsub.f32 %v1819_v16, %v1927_v19 }
 0x21d   : > { %v2126_v49 = vpop.eup %1307  ;;  %1327 = vpow2.f32 %v820_v57  ;;  %v2456_v25 = vsub.f32 %v1825_v20, %v1927_v19  ;;  %v2457_v16 = vsub.f32 %v2417_v30, %v1964_v1  ;;  %v2459_v20 = vsub.f32 %v2418_v47, %v1964_v1 }
 0x21e   : > { %v1310_v0 = vpop.eup %1309  ;;  %1329 = vpow2.f32 %v822_v21  ;;  %v918_v38 = vpack.c.bf16 %v2126_v49, %v2118_v39  ;;  %v842_v54 = vmul.f32 1.442695, %v2454_v46  ;;  %v2460_v30 = vsub.f32 %v1837_v37, %v1927_v19 }
 0x21f   : > { %v1312_v52 = vpop.eup %1311  ;;  %1331 = vpow2.f32 %v824_v36  ;;  %v848_v17 = vmul.f32 1.442695, %v2457_v16  ;;  %v2463_v37 = vsub.f32 %v2420_v18, %v1964_v1  ;;  %v2466_v18 = vsub.f32 %v1855_v61, %v1927_v19 }
 0x220   : > { %v1314_v24 = vpop.eup %1313  ;;  %1333 = vpow2.f32 %v826_v40  ;;  %v911_v51 = vpack.c.bf16 %v1312_v52, %v1310_v0  ;;  %v844_v40 = vmul.f32 1.442695, %v2455_v58  ;;  %v2458_v52 = vsub.f32 %v1831_v29, %v1927_v19  ;;  %v2469_v58 = vld [vmem:[#allocation20_spill] sm:$0xff] }
 0x221   : > { %v1316_v15 = vpop.eup %1315  ;;  %1335 = vpow2.f32 %v828_v60  ;;  %v846_v60 = vmul.f32 1.442695, %v2456_v25  ;;  %v2461_v29 = vsub.f32 %v2419_v6, %v1964_v1  ;;  %v2464_v6 = vsub.f32 %v1849_v53, %v1927_v19 }
 0x222   : > { %v1318_v3 = vpop.eup %1317  ;;  %1337 = vpow2.f32 %v830_v56  ;;  %950 = vmatprep.subr.bf16.mxu1 %v911_v51  ;;  %v913_v42 = vpack.c.bf16 %v1316_v15, %v1314_v24  ;;  %v850_v27 = vmul.f32 1.442695, %v2458_v52  ;;  %v852_v24 = vmul.f32 1.442695, %v2459_v20  ;;  %v2474_v52 = vld [vmem:[#allocation23_spill] sm:$0xff] }
 0x223   : > { %v1320_v57 = vpop.eup %1319  ;;  %1339 = vpow2.f32 %v832_v63  ;;  %951 = vmatpush1.bf16.msra.mxu1 %v910_v35  ;;  %v856_v51 = vmul.f32 1.442695, %v2461_v29  ;;  %v866_v46 = vmul.f32 1.442695, %v2466_v18  ;;  %v2468_v28 = vsub.f32 %v1861_v5, %v1927_v19 }
 0x224   : > { %v1322_v21 = vpop.eup %1321  ;;  %1341 = vpow2.f32 %v834_v43  ;;  %952 = vmatprep.subr.bf16.mxu1 %v913_v42  ;;  %v915_v36 = vpack.c.bf16 %v1320_v57, %v1318_v3  ;;  %v854_v43 = vmul.f32 1.442695, %v2460_v30  ;;  %v2470_v61 = vsub.f32 %v2469_v58, %v1964_v1 }
 0x225   : > { %v1324_v12 = vpop.eup %1323  ;;  %1343 = vpow2.f32 %v836_v59  ;;  %v2462_v59 = vsub.f32 %v1843_v45, %v1927_v19  ;;  %v2465_v45 = vsub.f32 %v2421_v10, %v1964_v1  ;;  %v870_v32 = vmul.f32 1.442695, %v2468_v28 }
 0x226   : > { %v1326_v55 = vpop.eup %1325  ;;  %1345 = vpow2.f32 %v838_v62  ;;  %v917_v35 = vpack.c.bf16 %v1324_v12, %v1322_v21  ;;  %v860_v62 = vmul.f32 1.442695, %v2463_v37  ;;  %v2473_v16 = vsub.f32 %v2424_v22, %v1964_v1 }
 0x227   : > { %v1328_v0 = vpop.eup %1327  ;;  %1347 = vpow2.f32 %v840_v50  ;;  %953 = vmatpush1.bf16.msra.mxu1 %v912_v13  ;;  %v858_v47 = vmul.f32 1.442695, %v2462_v59  ;;  %v864_v8 = vmul.f32 1.442695, %v2465_v45  ;;  %v2475_v39 = vsub.f32 %v2474_v52, %v1927_v19  ;;  %v2486_v45 = vld [vmem:[#allocation30_spill] sm:$0xff] }
 0x228   : > { %v1330_v56 = vpop.eup %1329  ;;  %1349 = vpow2.f32 %v842_v54  ;;  %954 = vmatprep.subr.bf16.mxu1 %v915_v36  ;;  %v919_v41 = vpack.c.bf16 %v1328_v0, %v1326_v55  ;;  %v2467_v36 = vsub.f32 %v2422_v2, %v1964_v1  ;;  %v2471_v2 = vld [vmem:[#allocation21_spill] sm:$0xff] }
 0x229   : > { %v1332_v63 = vpop.eup %1331  ;;  %1351 = vpow2.f32 %v844_v40  ;;  %v872_v40 = vmul.f32 1.442695, %v2470_v61  ;;  %v878_v49 = vmul.f32 1.442695, %v2475_v39 }
 0x22a   : > { %v1334_v7 = vpop.eup %1333  ;;  %1353 = vpow2.f32 %v846_v60  ;;  %v868_v10 = vmul.f32 1.442695, %v2467_v36  ;;  %v2472_v60 = vsub.f32 %v2471_v2, %v1927_v19  ;;  %v2490_v36 = vsub.f32 %v2429_v11, %v1964_v1 }
 0x22b   : > { %v1336_v13 = vpop.eup %1335  ;;  %1355 = vpow2.f32 %v848_v17  ;;  %955 = vmatpush1.bf16.msra.mxu1 %v914_v34  ;;  %v920_v15 = vpack.c.bf16 %v1334_v7, %v1330_v56  ;;  %v862_v34 = vmul.f32 1.442695, %v2464_v6  ;;  %v876_v17 = vmul.f32 1.442695, %v2473_v16 }
 0x22c   : > { %v1338_v4 = vpop.eup %1337  ;;  %1357 = vpow2.f32 %v850_v27  ;;  %956 = vmatprep.subr.bf16.mxu1 %v917_v35  ;;  %v921_v3 = vpack.c.bf16 %v1336_v13, %v1332_v63  ;;  %v874_v35 = vmul.f32 1.442695, %v2472_v60  ;;  %v2476_v27 = vsub.f32 %v2425_v33, %v1964_v1 }
 0x22d   : > { %v1340_v26 = vpop.eup %1339  ;;  %1359 = vpow2.f32 %v852_v24  ;;  %v2477_v24 = vld [vmem:[#allocation25_spill] sm:$0xff]  ;;  %v2479_v13 = vsub.f32 %v2426_v23, %v1964_v1 }
 0x22e   : > { %v1342_v42 = vpop.eup %1341  ;;  %1361 = vpow2.f32 %v854_v43  ;;  %v2478_v7 = vsub.f32 %v2477_v24, %v1927_v19 }
 0x22f   : > { %v1344_v57 = vpop.eup %1343  ;;  %1363 = vpow2.f32 %v856_v51  ;;  %957 = vmatpush1.bf16.msra.mxu1 %v916_v14  ;;  %v922_v50 = vpack.c.bf16 %v1342_v42, %v1338_v4  ;;  %v884_v29 = vmul.f32 1.442695, %v2479_v13  ;;  %v2480_v4 = vld [vmem:[#allocation27_spill] sm:$0xff]  ;;  %v2484_v42 = vld [vmem:[#allocation29_spill] sm:$0xff] }
 0x230   : > { %v1346_v21 = vpop.eup %1345  ;;  %1365 = vpow2.f32 %v858_v47  ;;  %958 = vmatprep.subr.bf16.mxu1 %v919_v41  ;;  %v923_v53 = vpack.c.bf16 %v1344_v57, %v1340_v26  ;;  %v880_v41 = vmul.f32 1.442695, %v2476_v27  ;;  %v882_v22 = vmul.f32 1.442695, %v2478_v7  ;;  %v2482_v47 = vld [vmem:[#allocation28_spill] sm:$0xff] }
 0x231   : > { %v1348_v54 = vpop.eup %1347  ;;  %1367 = vpow2.f32 %v860_v62  ;;  %v2481_v33 = vsub.f32 %v2480_v4, %v1927_v19  ;;  %v2485_v6 = vsub.f32 %v2484_v42, %v1927_v19 }
 0x232   : > { %v1350_v12 = vpop.eup %1349  ;;  %1369 = vpow2.f32 %v862_v34 }
 0x233   : > { %v1352_v14 = vpop.eup %1351  ;;  %1371 = vpow2.f32 %v864_v8  ;;  %959 = vmatpush1.bf16.msra.mxu1 %v918_v38  ;;  %v924_v55 = vpack.c.bf16 %v1350_v12, %v1346_v21  ;;  %v890_v23 = vmul.f32 1.442695, %v2485_v6  ;;  %v2487_v8 = vsub.f32 %v2486_v45, %v1964_v1 }
 0x234   : > { %v1354_v25 = vpop.eup %1353  ;;  %1373 = vpow2.f32 %v866_v46  ;;  %960 = vmatprep.subr.bf16.mxu1 %v921_v3  ;;  %v925_v5 = vpack.c.bf16 %v1352_v14, %v1348_v54  ;;  %v2483_v3 = vsub.f32 %v2482_v47, %v1964_v1  ;;  %v2488_v46 = vld [vmem:[#allocation31_spill] sm:$0xff] }
 0x235   : > { %v1356_v0 = vpop.eup %1355  ;;  %1375 = vpow2.f32 %v868_v10  ;;  %v892_v21 = vmul.f32 1.442695, %v2487_v8  ;;  %v896_v10 = vmul.f32 1.442695, %v2490_v36  ;;  %v1011_v8 = vld [vmem:[%s330_s16] sm:$0xf] }
 0x236   : > { %v1358_v56 = vpop.eup %1357  ;;  %1377 = vpow2.f32 %v870_v32  ;;  %v888_v26 = vmul.f32 1.442695, %v2483_v3  ;;  %v2491_v32 = vld [vmem:[#allocation33_spill] sm:$0xff]  ;;  %v993_v3 = vlaneseq }
 0x237   : > { %v1360_v38 = vpop.eup %1359  ;;  %1379 = vpow2.f32 %v872_v40  ;;  %961 = vmatpush1.bf16.msra.mxu1 %v920_v15  ;;  %v926_v63 = vpack.c.bf16 %v1358_v56, %v1354_v25  ;;  %v886_v15 = vmul.f32 1.442695, %v2481_v33  ;;  %v2492_v14 = vsub.f32 %v2491_v32, %v1927_v19 }
 0x238   : > { %v1362_v20 = vpop.eup %1361  ;;  %1381 = vpow2.f32 %v874_v35  ;;  %962 = vmatprep.subr.bf16.mxu1 %v923_v53  ;;  %v927_v30 = vpack.c.bf16 %v1360_v38, %v1356_v0  ;;  %v2489_v53 = vsub.f32 %v2488_v46, %v1927_v19  ;;  %v2493_v25 = vsub.f32 %v2430_v9, %v1964_v1  ;;  %v2494_v35 = vld [vmem:[#allocation36_spill] sm:$0xff] }
 0x239   : > { %v1364_v43 = vpop.eup %1363  ;;  %1383 = vpow2.f32 %v876_v17  ;;  %v898_v58 = vmul.f32 1.442695, %v2492_v14  ;;  %v2495_v11 = vsub.f32 %v2494_v35, %v1927_v19  ;;  %v2496_v0 = vsub.f32 %v1924_v31, %v1964_v1 }
 0x23a   : > { %v1366_v51 = vpop.eup %1365  ;;  %1385 = vpow2.f32 %v878_v49  ;;  %v900_v2 = vmul.f32 1.442695, %v2493_v25  ;;  %v1012_v46 = vunpack.c.l.bf16 %v1011_v8 }
 0x23b   : > { %v1368_v59 = vpop.eup %1367  ;;  %1387 = vpow2.f32 %v880_v41  ;;  %963 = vmatpush1.bf16.msra.mxu1 %v922_v50  ;;  %v928_v37 = vpack.c.bf16 %v1366_v51, %v1362_v20  ;;  %v894_v50 = vmul.f32 1.442695, %v2489_v53  ;;  %v904_v16 = vmul.f32 1.442695, %v2496_v0 }
 0x23c   : > { %v1370_v62 = vpop.eup %1369  ;;  %1389 = vpow2.f32 %v882_v22  ;;  %964 = vmatprep.subr.bf16.mxu1 %v925_v5  ;;  %v929_v34 = vpack.c.bf16 %v1368_v59, %v1364_v43 }
 0x23d   : > { %v1372_v57 = vpop.eup %1371  ;;  %1391 = vpow2.f32 %v884_v29 }
 0x23e   : > { %v1374_v18 = vpop.eup %1373  ;;  %1393 = vpow2.f32 %v886_v15  ;;  %v2497_v15 = vld [vmem:[#allocation35_spill] sm:$0xff] }
 0x23f   : > { %v1376_v54 = vpop.eup %1375  ;;  %1395 = vpow2.f32 %v888_v26  ;;  %965 = vmatpush1.bf16.msra.mxu1 %v924_v55  ;;  %v930_v12 = vpack.c.bf16 %v1374_v18, %v1370_v62  ;;  %v902_v55 = vmul.f32 1.442695, %v2495_v11  ;;  %v1202_v59 = vcombine.low %v2497_v15, %v2497_v15 }
 0x240   : > { %v1378_v28 = vpop.eup %1377  ;;  %1397 = vpow2.f32 %v890_v23  ;;  %966 = vmatprep.subr.bf16.mxu1 %v927_v30  ;;  %v931_v61 = vpack.c.bf16 %v1376_v54, %v1372_v57 }
 0x241   : > { %v1380_v40 = vpop.eup %1379  ;;  %1399 = vpow2.f32 %v892_v21 }
 0x242   : > { %v1382_v60 = vpop.eup %1381  ;;  %1401 = vpow2.f32 %v894_v50 }
 0x243   : > { %v1384_v5 = vpop.eup %1383  ;;  %1403 = vpow2.f32 %v896_v10  ;;  %967 = vmatpush1.bf16.msra.mxu1 %v926_v63  ;;  %v932_v17 = vpack.c.bf16 %v1382_v60, %v1378_v28 }
 0x244   : > { %v1386_v56 = vpop.eup %1385  ;;  %1405 = vpow2.f32 %v898_v58  ;;  %968 = vmatprep.subr.bf16.mxu1 %v929_v34  ;;  %v933_v52 = vpack.c.bf16 %v1384_v5, %v1380_v40 }
 0x245   : > { %v1388_v9 = vpop.eup %1387  ;;  %1407 = vpow2.f32 %v900_v2 }
 0x246   : > { %v1390_v39 = vpop.eup %1389  ;;  %1409 = vpow2.f32 %v902_v55 }
 0x247   : > { %v1392_v49 = vpop.eup %1391  ;;  %1411 = vpow2.f32 %v904_v16  ;;  %969 = vmatpush1.bf16.msra.mxu1 %v928_v37  ;;  %v934_v19 = vpack.c.bf16 %v1390_v39, %v1386_v56 }
 0x248   : > { %v1394_v38 = vpop.eup %1393  ;;  %970 = vmatprep.subr.bf16.mxu1 %v931_v61  ;;  %v935_v27 = vpack.c.bf16 %v1392_v49, %v1388_v9 }
 0x249   : > { %v1396_v41 = vpop.eup %1395 }
 0x24a   : > { %v1398_v31 = vpop.eup %1397 }
 0x24b   : > { %v1400_v1 = vpop.eup %1399  ;;  %971 = vmatpush1.bf16.msra.mxu1 %v930_v12  ;;  %v936_v63 = vpack.c.bf16 %v1398_v31, %v1394_v38 }
 0x24c   : > { %v1402_v20 = vpop.eup %1401  ;;  %972 = vmatprep.subr.bf16.mxu1 %v933_v52  ;;  %v937_v24 = vpack.c.bf16 %v1400_v1, %v1396_v41 }
 0x24d   : > { %v1404_v7 = vpop.eup %1403 }
 0x24e   : > { %v1406_v22 = vpop.eup %1405 }
 0x24f   : > { %v1408_v30 = vpop.eup %1407  ;;  %973 = vmatpush1.bf16.msra.mxu1 %v932_v17  ;;  %v938_v43 = vpack.c.bf16 %v1406_v22, %v1402_v20 }
 0x250   : > { %v1410_v13 = vpop.eup %1409  ;;  %974 = vmatprep.subr.bf16.mxu1 %v935_v27  ;;  %v939_v29 = vpack.c.bf16 %v1408_v30, %v1404_v7 }
 0x251   : > { %v1412_v51 = vpop.eup %1411  ;;  %v940_v4 = vpack.c.bf16 %v2087_v44, %v1410_v13 }
 0x252   : > { %v941_v33 = vpack.c.bf16 %v2089_v48, %v1412_v51  ;;  %v994_v48 = vshrl.u32 %v993_v3, 7 }
 0x253   : > { %975 = vmatpush1.bf16.msra.mxu1 %v934_v19 }
 0x254   : > { %976 = vmatprep.subr.bf16.mxu1 %v937_v24  ;;  %v995_v62 = vsub.s32 4, %v994_v48 }
 0x257   : > { %977 = vmatpush1.bf16.msra.mxu1 %v936_v63 }
 0x258   : > { %978 = vmatprep.subr.bf16.mxu1 %v939_v29 }
 0x25b   : > { %979 = vmatpush1.bf16.msra.mxu1 %v938_v43 }
 0x25c   : > { %980 = vmatprep.subr.bf16.mxu1 %v941_v33 }
 0x25f   : > { %981 = vmatpush1.bf16.msra.mxu1 %v940_v4 }
 0x262   : > { %983 = vmatmul.mubr.bf16.vlgmr.msra.gmra.mrb[0].mxu1 %v1202_v59 }
 0x26b   : > { %v1007_v57 = vpop.permute.xlu1 %1006 }
 0x335   : > { %v984_v47 = vpop.f32.mrb[0].mxu1 }
 0x336   : > { %1413 = vrcp.f32 %v984_v47  ;;  %v986_v26 = vpop.f32.mrb[1].mxu1 }
 0x337   : > { %1415 = vrcp.f32 %v986_v26  ;;  %v988_v44 = vpop.f32.mrb[2].mxu1 }
 0x338   : > { %v989_v37 = vpop.f32.mrb[3].mxu1 }
 0x340   : > { %v1414_v42 = vpop.eup %1413 }
 0x341   : > { %v1416_v6 = vpop.eup %1415  ;;  %v996_v23 = vrot.slane %v1414_v42, %v995_v62 }
 0x342   : > { %v1000_v34 = vrot.slane %v1416_v6, %v995_v62 }
 0x343   : > { %v1001_v45 = vmul.f32 %v996_v23, %v984_v47 }
 0x344   : > { %v1002_v21 = vmul.f32 %v1000_v34, %v986_v26 }
 0x345   : > { %v1009_v18 = vadd.f32 %v1007_v57, %v1001_v45 }
 0x346   : > { %v1010_v53 = vadd.f32 %v1007_v57, %v1002_v21 }
 0x348   : > { %v1015_v50 = vcombine.low %v1009_v18, %v1010_v53 }
 0x34a   : > { %v1017_v54 = vadd.f32 %v1015_v50, %v1012_v46 }
 0x34c   : > { %1018 = vst [vmem:[%s321_s14] sm:$0xff] %v1017_v54 }
 0x34d   : > { %1460 = shalt.err (!%p1457_p4)
}
 0x34e   : > { %s1461_s25 = scalar_lea.hbm %s2270_s11, 128  ;;  %s1465_s17 = scalar_lea.hbm %s2324_s5, 256 }
 0x34f   : > { %p1462_p10 = scmp.ne.s32.totalorder %s2270_s11, %s1461_s25  ;;  %p1466_p2 = scmp.lt.u32.totalorder %s2270_s11, %s2324_s5 }
 0x350   : > { %p1467_p5 = scmp.lt.u32.totalorder %s1465_s17, %s1461_s25  ;;  %p1469_p8 = scmp.lt.u32.totalorder %s1461_s25, %s2270_s11 }
 0x351   : > { %p1463_p12 = pnand %p1462_p10, %p2498_p11 }
 0x352   : > { %p1468_p9 = por %p1467_p5, %p1466_p2 }
 0x353   : > { %p1464_p1 = pneg %p1463_p12 }
 0x354   : > { %p1470_p0 = por %p1469_p8, %p1468_p9 }
 0x356   : > { %p1471_p7 = pnand %p1470_p0, %p1464_p1 }
 0x358   : > { %1474 = shalt.err (!%p1471_p7)
}
 0x359   : > { %1216 = dma.vmem_to_hbm [thread:$0]  (%p2498_p11), %s2272_s28, 128, %s2270_s11, %s1020_s9  }
 0x35a PF: > { %s1048_s14 = sand.u32 1, %s1509_s18   ;;  %p2499_p13 = scmp.ne.s32.totalorder %s2378_s8, 0 }
 0x35b   : > { %p2500_p3 = scmp.ge.s32.totalorder %s1529_s23, 2  ;;  %s1049_s10 = scalar_lea.sflag [#allocation4], %s1048_s14 }
 0x35d   : > { %p1223_p6 = pnand %p2500_p3, %p2499_p13 }
 0x35f   : > { %1504 = dma.done.wait (!%p1223_p6), %s1049_s10, 128  }
 0x360   : > { %1506 = vsyncadd (!%p1223_p6), %s1049_s10, 4294967168  ;;  %s21_s23 = sadd.s32 1, %s1529_s23   ;;  %s2501_s18 = smov %s1513_s19 }
 0x361   : > { %p18_p4 = scmp.ge.s32.totalorder %s21_s23, 4   ;;  %s2502_s19 = smov %s1517_s20 }
 0x362   : > { %s2503_s20 = smov %s1620_s7  ;;  %s2504_s21 = smov %s1525_s22 }
 0x363   : > { %s2505_s22 = smov %s2507_s26  ;;  %20 = sbr.rel (!%p18_p4) target bundleno = 6 (0x6), region = 94 }
 0x36a   :  { %1054 = vsyncpa [#allocation3], 1 }
 0x36b   :  { %1056 = vsyncpa [#allocation3 + $0x1], 1 }
 0x36c   :  { %1057 = vsyncpa [#allocation4], 1 }
 0x36d   :  { %1059 = vsyncpa [#allocation4 + $0x1], 1 }

</bundles_post_ra>
